<compile_context>
chip_gen: v5e
topology: v5e:2x2
jax: 0.10.0
libtpu: 0.0.40
codegen_flags: <defaults>
</compile_context>

<pallas_src>
import jax
import jax.numpy as jnp
from jax import lax
from jax.experimental import pallas as pl
from jax.experimental.pallas import tpu as pltpu


# ---------------------------------------------------------------------------
# Kernels
# ---------------------------------------------------------------------------
def embedding_vmem_kernel(ids_ref, table_ref, pos_ref, out_ref):
    """Gather from a VMEM-resident table, fused positional add.

    ids_ref:   (T_pad,)  int32 SMEM  -- all token ids (scalar prefetch)
    table_ref: (V, D)    VMEM        -- full table, resident (fetched once)
    pos_ref:   (S, D)    VMEM        -- positional encodings, resident
    out_ref:   (tile, D) VMEM        -- token_emb + pos_emb for this tile
    """
    tile = out_ref.shape[0]
    S = pos_ref.shape[0]
    base = pl.multiple_of(pl.program_id(0) * tile, tile)

    def body(j, carry):
        row = ids_ref[base + j]
        p = (base + j) % S                       # position within the sequence
        out_ref[pl.ds(j, 1), :] = (
            table_ref[pl.ds(row, 1), :] + pos_ref[pl.ds(p, 1), :]
        ).astype(out_ref.dtype)
        return carry

    lax.fori_loop(0, tile, body, 0, unroll=8)
    # TODO(synk): training-mode dropout would mask here via pltpu.prng_seed /
    #             pltpu.prng_random_bits; identity matches model.eval().


def embedding_hbm_kernel(ids_ref, pos_ref, table_hbm, out_ref, gbuf, sem):
    """Large-vocab path: gather rows straight from HBM, fused positional add.

    ids_ref:   (T_pad,)  int32 SMEM  -- all token ids (scalar prefetch)
    pos_ref:   (S, D)    VMEM        -- positional encodings, resident
    table_hbm: (V, D)    HBM         -- full table, never resident in VMEM
    out_ref:   (tile, D) VMEM
    gbuf:      (tile, D) VMEM scratch -- gather landing buffer
    sem:       (1,)      DMA semaphore (shared by every row copy)
    """
    tile = out_ref.shape[0]
    S = pos_ref.shape[0]
    base = pl.multiple_of(pl.program_id(0) * tile, tile)

    # Issue one row DMA per token; all copies signal the same semaphore.
    def issue(j, carry):
        row = ids_ref[base + j]
        pltpu.make_async_copy(
            table_hbm.at[pl.ds(row, 1), :],
            gbuf.at[pl.ds(j, 1), :],
            sem.at[0],
        ).start()
        return carry

    lax.fori_loop(0, tile, issue, 0, unroll=8)

    # SINGLE aggregate wait: DMA semaphores count bytes and byte counts add, so
    # one (tile, D)-sized descriptor drains all `tile` row copies at once.
    # INVARIANT: bytes issued above must sum to exactly gbuf's size (tile rows
    # of identical (1, D) copies) and tile <= V (guaranteed by the wrapper).
    pltpu.make_async_copy(table_hbm.at[pl.ds(0, tile), :], gbuf, sem.at[0]).wait()

    def addpos(j, carry):
        p = (base + j) % S
        out_ref[pl.ds(j, 1), :] = (
            gbuf[pl.ds(j, 1), :] + pos_ref[pl.ds(p, 1), :]
        ).astype(out_ref.dtype)
        return carry

    lax.fori_loop(0, tile, addpos, 0, unroll=8)
    # TODO(synk): eval-mode dropout = identity (see note above).


# ---------------------------------------------------------------------------
# Host-side glue
# ---------------------------------------------------------------------------
def make_positional_encoding(d_model, max_len):
    pos = jnp.arange(max_len, dtype=jnp.float32)[:, None]          # (max_len, 1)
    _2i = jnp.arange(0, d_model, 2, dtype=jnp.float32)             # (d_model/2,)
    div = jnp.power(10000.0, _2i / d_model)                        # (d_model/2,)
    enc = jnp.zeros((max_len, d_model), dtype=jnp.float32)
    enc = enc.at[:, 0::2].set(jnp.sin(pos / div))
    enc = enc.at[:, 1::2].set(jnp.cos(pos / div))
    return enc


def _round_up(x, m):
    return (x + m - 1) // m * m


def _choose_tile(T, tile_tokens):
    """Tile of flattened tokens: multiple of 8 (sublane) when multi-tile,
    no tail padding when possible, >= 2 tiles for small problems (megacore)."""
    if T <= tile_tokens:
        if T >= 16 and T % 16 == 0:
            return T // 2                  # two padding-free tiles
        return T                           # single tile == full extent
    t = max(8, min(tile_tokens, T) // 8 * 8)
    for cand in range(t, 7, -8):           # largest multiple-of-8 tile dividing T
        if T % cand == 0:
            return cand
    return t                               # fall back: pad the tail


def transformer_embedding(ids, table, pos_enc, *, tile_tokens=512,
                          vmem_table_budget_bytes=16 << 20):
    """ids: (B, S) int32, table: (V, D), pos_enc: (max_len, D)."""
    B, S = ids.shape
    V, D = table.shape
    T = B * S
    itemsize = table.dtype.itemsize

    table_bytes = V * D * itemsize
    # Conservative budget works on every generation (v7x has only 64 MiB/core).
    use_vmem_table = table_bytes <= vmem_table_budget_bytes

    if not use_vmem_table:
        # Aggregate-wait descriptor slices tile rows of the table: need tile<=V.
        tile_tokens = min(tile_tokens, max(8, (V // 8) * 8))

    tile = _choose_tile(T, tile_tokens)
    T_pad = _round_up(T, tile)
    n_tiles = T_pad // tile

    ids_flat = ids.reshape(T).astype(jnp.int32)
    if T_pad != T:
        ids_flat = jnp.pad(ids_flat, (0, T_pad - T))     # pad id 0 (valid row)

    pos_slice = pos_enc[:S, :].astype(table.dtype)       # (S, D), small, resident

    out_block_bytes = tile * D * itemsize
    pos_bytes = S * D * itemsize

    if use_vmem_table:
        kernel = embedding_vmem_kernel
        in_specs = [
            pl.BlockSpec((V, D), lambda t, ids: (0, 0)),  # table: resident
            pl.BlockSpec((S, D), lambda t, ids: (0, 0)),  # pos:   resident
        ]
        scratch_shapes = []
        operands = (ids_flat, table, pos_slice)
        vmem_need = table_bytes + pos_bytes + 2 * out_block_bytes
        bytes_accessed = table_bytes + pos_bytes + T_pad * D * itemsize
    else:
        kernel = embedding_hbm_kernel
        in_specs = [
            pl.BlockSpec((S, D), lambda t, ids: (0, 0)),  # pos: resident
            pl.BlockSpec(memory_space=pl.ANY),            # table stays in HBM
        ]
        scratch_shapes = [
            pltpu.VMEM((tile, D), table.dtype),           # gather landing buffer
            pltpu.SemaphoreType.DMA((1,)),
        ]
        operands = (ids_flat, pos_slice, table)
        vmem_need = pos_bytes + 3 * out_block_bytes
        bytes_accessed = pos_bytes + 2 * T_pad * D * itemsize

    # Raise above small default scoped limits, stay under v7x's 64 MiB physical.
    vmem_limit = int(min(max(2 * vmem_need + (4 << 20), 32 << 20), 56 << 20))

    out = pl.pallas_call(
        kernel,
        out_shape=jax.ShapeDtypeStruct((T_pad, D), table.dtype),
        grid_spec=pltpu.PrefetchScalarGridSpec(
            num_scalar_prefetch=1,                        # ids -> SMEM
            grid=(n_tiles,),
            in_specs=in_specs,
            out_specs=pl.BlockSpec((tile, D), lambda t, ids: (t, 0)),
            scratch_shapes=scratch_shapes,
        ),
        compiler_params=pltpu.CompilerParams(
            dimension_semantics=("parallel",),
            vmem_limit_bytes=vmem_limit,
        ),
        cost_estimate=pl.CostEstimate(
            flops=int(T_pad * D),
            transcendentals=0,
            bytes_accessed=int(bytes_accessed),
        ),
    )(*operands)

    if T_pad != T:
        out = out[:T]
    return out.reshape(B, S, D)


if __name__ == "__main__":
    # Module hyperparameters (small, consistent with the forward pass).
    vocab_size = 512
    d_model = 128        # multiple of 128 -> lane-dense output stores
    max_len = 16
    dropout_prob = 0.1   # identity in eval mode
    padding_idx = 1

    batch, seq = 2, 8

    key = jax.random.PRNGKey(0)
    k_table, k_ids = jax.random.split(key)

    # nn.Embedding init ~ N(0, 1), padding_idx row zeroed.
    table = jax.random.normal(k_table, (vocab_size, d_model), dtype=jnp.float32)
    table = table.at[padding_idx, :].set(0.0)

    pos_enc = make_positional_encoding(d_model, max_len)

    ids = jax.random.randint(k_ids, (batch, seq), 0, vocab_size, dtype=jnp.int32)

    out = transformer_embedding(ids, table, pos_enc)
    out = jax.block_until_ready(out)

    # Reference check (pure JAX).
    ref = table[ids] + pos_enc[:seq, :][None, :, :]
    assert out.shape == (batch, seq, d_model)
    assert jnp.allclose(out, ref, atol=1e-5, rtol=1e-5)

    print("KERNEL_OK")
</pallas_src>

<mosaic_0001>
module attributes {stable_mosaic.version = 11 : i64} {
  func.func @embedding_vmem_kernel(%arg0: i32, %arg1: memref<16xi32, #tpu.memory_space<smem>>, %arg2: memref<512x128xf32, #tpu.memory_space<vmem>>, %arg3: memref<8x128xf32, #tpu.memory_space<vmem>>, %arg4: memref<8x128xf32, #tpu.memory_space<vmem>>) attributes {dimension_semantics = [#tpu.dimension_semantics<parallel>], iteration_bounds = array<i64: 2>, scalar_prefetch = 1 : i64, scratch_operands = 0 : i64, tpu.core_type = #tpu.core_type<tc>, window_params = [{pipeline_mode = #tpu.pipeline_mode<synchronous>, transform_indices = @transform_0, window_bounds = array<i64: 512, 128>}, {pipeline_mode = #tpu.pipeline_mode<synchronous>, transform_indices = @transform_1, window_bounds = array<i64: 8, 128>}, {transform_indices = @transform_2, window_bounds = array<i64: 8, 128>}]} {
    %c8_i32 = arith.constant 8 : i32
    %0 = arith.muli %arg0, %c8_i32 : i32
    %1 = tpu.assume_multiple %0, 8 : i32
    %c0_i32 = arith.constant 0 : i32
    %2 = arith.addi %1, %c0_i32 : i32
    %3 = arith.index_cast %2 : i32 to index
    %4 = memref.load %arg1[%3] : memref<16xi32, #tpu.memory_space<smem>>
    %5 = arith.addi %1, %c0_i32 : i32
    %c8_i32_0 = arith.constant 8 : i32
    %c0_i32_1 = arith.constant 0 : i32
    %6 = arith.cmpi eq, %c8_i32_0, %c0_i32_1 : i32
    %c1_i32 = arith.constant 1 : i32
    %7 = arith.select %6, %c1_i32, %c8_i32_0 : i32
    %8 = arith.remsi %5, %7 : i32
    %c0_i32_2 = arith.constant 0 : i32
    %9 = arith.cmpi ne, %8, %c0_i32_2 : i32
    %c0_i32_3 = arith.constant 0 : i32
    %10 = arith.cmpi slt, %8, %c0_i32_3 : i32
    %c0_i32_4 = arith.constant 0 : i32
    %11 = arith.cmpi slt, %7, %c0_i32_4 : i32
    %12 = arith.xori %10, %11 : i1
    %13 = arith.andi %12, %9 : i1
    %14 = arith.addi %8, %7 : i32
    %15 = arith.select %13, %14, %8 : i32
    %16 = arith.index_cast %4 : i32 to index
    %c0 = arith.constant 0 : index
    %17 = vector.load %arg2[%16, %c0] : memref<512x128xf32, #tpu.memory_space<vmem>>, vector<1x128xf32>
    %18 = arith.index_cast %15 : i32 to index
    %c0_5 = arith.constant 0 : index
    %19 = vector.load %arg3[%18, %c0_5] : memref<8x128xf32, #tpu.memory_space<vmem>>, vector<1x128xf32>
    %20 = arith.addf %17, %19 : vector<1x128xf32>
    %21 = arith.index_cast %c0_i32 : i32 to index
    %c0_6 = arith.constant 0 : index
    %22 = vector.load %arg4[%21, %c0_6] : memref<8x128xf32, #tpu.memory_space<vmem>>, vector<1x128xf32>
    tpu.vector_store %arg4[%21, %c0_6], %20 {strides = array<i32>} : memref<8x128xf32, #tpu.memory_space<vmem>>, vector<1x128xf32>,
    %c1_i32_7 = arith.constant 1 : i32
    %23 = arith.addi %1, %c1_i32_7 : i32
    %24 = arith.index_cast %23 : i32 to index
    %25 = memref.load %arg1[%24] : memref<16xi32, #tpu.memory_space<smem>>
    %26 = arith.addi %1, %c1_i32_7 : i32
    %c8_i32_8 = arith.constant 8 : i32
    %c0_i32_9 = arith.constant 0 : i32
    %27 = arith.cmpi eq, %c8_i32_8, %c0_i32_9 : i32
    %c1_i32_10 = arith.constant 1 : i32
    %28 = arith.select %27, %c1_i32_10, %c8_i32_8 : i32
    %29 = arith.remsi %26, %28 : i32
    %c0_i32_11 = arith.constant 0 : i32
    %30 = arith.cmpi ne, %29, %c0_i32_11 : i32
    %c0_i32_12 = arith.constant 0 : i32
    %31 = arith.cmpi slt, %29, %c0_i32_12 : i32
    %c0_i32_13 = arith.constant 0 : i32
    %32 = arith.cmpi slt, %28, %c0_i32_13 : i32
    %33 = arith.xori %31, %32 : i1
    %34 = arith.andi %33, %30 : i1
    %35 = arith.addi %29, %28 : i32
    %36 = arith.select %34, %35, %29 : i32
    %37 = arith.index_cast %25 : i32 to index
    %c0_14 = arith.constant 0 : index
    %38 = vector.load %arg2[%37, %c0_14] : memref<512x128xf32, #tpu.memory_space<vmem>>, vector<1x128xf32>
    %39 = arith.index_cast %36 : i32 to index
    %c0_15 = arith.constant 0 : index
    %40 = vector.load %arg3[%39, %c0_15] : memref<8x128xf32, #tpu.memory_space<vmem>>, vector<1x128xf32>
    %41 = arith.addf %38, %40 : vector<1x128xf32>
    %42 = arith.index_cast %c1_i32_7 : i32 to index
    %c0_16 = arith.constant 0 : index
    %43 = vector.load %arg4[%42, %c0_16] : memref<8x128xf32, #tpu.memory_space<vmem>>, vector<1x128xf32>
    tpu.vector_store %arg4[%42, %c0_16], %41 {strides = array<i32>} : memref<8x128xf32, #tpu.memory_space<vmem>>, vector<1x128xf32>,
    %c2_i32 = arith.constant 2 : i32
    %44 = arith.addi %1, %c2_i32 : i32
    %45 = arith.index_cast %44 : i32 to index
    %46 = memref.load %arg1[%45] : memref<16xi32, #tpu.memory_space<smem>>
    %47 = arith.addi %1, %c2_i32 : i32
    %c8_i32_17 = arith.constant 8 : i32
    %c0_i32_18 = arith.constant 0 : i32
    %48 = arith.cmpi eq, %c8_i32_17, %c0_i32_18 : i32
    %c1_i32_19 = arith.constant 1 : i32
    %49 = arith.select %48, %c1_i32_19, %c8_i32_17 : i32
    %50 = arith.remsi %47, %49 : i32
    %c0_i32_20 = arith.constant 0 : i32
    %51 = arith.cmpi ne, %50, %c0_i32_20 : i32
    %c0_i32_21 = arith.constant 0 : i32
    %52 = arith.cmpi slt, %50, %c0_i32_21 : i32
    %c0_i32_22 = arith.constant 0 : i32
    %53 = arith.cmpi slt, %49, %c0_i32_22 : i32
    %54 = arith.xori %52, %53 : i1
    %55 = arith.andi %54, %51 : i1
    %56 = arith.addi %50, %49 : i32
    %57 = arith.select %55, %56, %50 : i32
    %58 = arith.index_cast %46 : i32 to index
    %c0_23 = arith.constant 0 : index
    %59 = vector.load %arg2[%58, %c0_23] : memref<512x128xf32, #tpu.memory_space<vmem>>, vector<1x128xf32>
    %60 = arith.index_cast %57 : i32 to index
    %c0_24 = arith.constant 0 : index
    %61 = vector.load %arg3[%60, %c0_24] : memref<8x128xf32, #tpu.memory_space<vmem>>, vector<1x128xf32>
    %62 = arith.addf %59, %61 : vector<1x128xf32>
    %63 = arith.index_cast %c2_i32 : i32 to index
    %c0_25 = arith.constant 0 : index
    %64 = vector.load %arg4[%63, %c0_25] : memref<8x128xf32, #tpu.memory_space<vmem>>, vector<1x128xf32>
    tpu.vector_store %arg4[%63, %c0_25], %62 {strides = array<i32>} : memref<8x128xf32, #tpu.memory_space<vmem>>, vector<1x128xf32>,
    %c3_i32 = arith.constant 3 : i32
    %65 = arith.addi %1, %c3_i32 : i32
    %66 = arith.index_cast %65 : i32 to index
    %67 = memref.load %arg1[%66] : memref<16xi32, #tpu.memory_space<smem>>
    %68 = arith.addi %1, %c3_i32 : i32
    %c8_i32_26 = arith.constant 8 : i32
    %c0_i32_27 = arith.constant 0 : i32
    %69 = arith.cmpi eq, %c8_i32_26, %c0_i32_27 : i32
    %c1_i32_28 = arith.constant 1 : i32
    %70 = arith.select %69, %c1_i32_28, %c8_i32_26 : i32
    %71 = arith.remsi %68, %70 : i32
    %c0_i32_29 = arith.constant 0 : i32
    %72 = arith.cmpi ne, %71, %c0_i32_29 : i32
    %c0_i32_30 = arith.constant 0 : i32
    %73 = arith.cmpi slt, %71, %c0_i32_30 : i32
    %c0_i32_31 = arith.constant 0 : i32
    %74 = arith.cmpi slt, %70, %c0_i32_31 : i32
    %75 = arith.xori %73, %74 : i1
    %76 = arith.andi %75, %72 : i1
    %77 = arith.addi %71, %70 : i32
    %78 = arith.select %76, %77, %71 : i32
    %79 = arith.index_cast %67 : i32 to index
    %c0_32 = arith.constant 0 : index
    %80 = vector.load %arg2[%79, %c0_32] : memref<512x128xf32, #tpu.memory_space<vmem>>, vector<1x128xf32>
    %81 = arith.index_cast %78 : i32 to index
    %c0_33 = arith.constant 0 : index
    %82 = vector.load %arg3[%81, %c0_33] : memref<8x128xf32, #tpu.memory_space<vmem>>, vector<1x128xf32>
    %83 = arith.addf %80, %82 : vector<1x128xf32>
    %84 = arith.index_cast %c3_i32 : i32 to index
    %c0_34 = arith.constant 0 : index
    %85 = vector.load %arg4[%84, %c0_34] : memref<8x128xf32, #tpu.memory_space<vmem>>, vector<1x128xf32>
    tpu.vector_store %arg4[%84, %c0_34], %83 {strides = array<i32>} : memref<8x128xf32, #tpu.memory_space<vmem>>, vector<1x128xf32>,
    %c4_i32 = arith.constant 4 : i32
    %86 = arith.addi %1, %c4_i32 : i32
    %87 = arith.index_cast %86 : i32 to index
    %88 = memref.load %arg1[%87] : memref<16xi32, #tpu.memory_space<smem>>
    %89 = arith.addi %1, %c4_i32 : i32
    %c8_i32_35 = arith.constant 8 : i32
    %c0_i32_36 = arith.constant 0 : i32
    %90 = arith.cmpi eq, %c8_i32_35, %c0_i32_36 : i32
    %c1_i32_37 = arith.constant 1 : i32
    %91 = arith.select %90, %c1_i32_37, %c8_i32_35 : i32
    %92 = arith.remsi %89, %91 : i32
    %c0_i32_38 = arith.constant 0 : i32
    %93 = arith.cmpi ne, %92, %c0_i32_38 : i32
    %c0_i32_39 = arith.constant 0 : i32
    %94 = arith.cmpi slt, %92, %c0_i32_39 : i32
    %c0_i32_40 = arith.constant 0 : i32
    %95 = arith.cmpi slt, %91, %c0_i32_40 : i32
    %96 = arith.xori %94, %95 : i1
    %97 = arith.andi %96, %93 : i1
    %98 = arith.addi %92, %91 : i32
    %99 = arith.select %97, %98, %92 : i32
    %100 = arith.index_cast %88 : i32 to index
    %c0_41 = arith.constant 0 : index
    %101 = vector.load %arg2[%100, %c0_41] : memref<512x128xf32, #tpu.memory_space<vmem>>, vector<1x128xf32>
    %102 = arith.index_cast %99 : i32 to index
    %c0_42 = arith.constant 0 : index
    %103 = vector.load %arg3[%102, %c0_42] : memref<8x128xf32, #tpu.memory_space<vmem>>, vector<1x128xf32>
    %104 = arith.addf %101, %103 : vector<1x128xf32>
    %105 = arith.index_cast %c4_i32 : i32 to index
    %c0_43 = arith.constant 0 : index
    %106 = vector.load %arg4[%105, %c0_43] : memref<8x128xf32, #tpu.memory_space<vmem>>, vector<1x128xf32>
    tpu.vector_store %arg4[%105, %c0_43], %104 {strides = array<i32>} : memref<8x128xf32, #tpu.memory_space<vmem>>, vector<1x128xf32>,
    %c5_i32 = arith.constant 5 : i32
    %107 = arith.addi %1, %c5_i32 : i32
    %108 = arith.index_cast %107 : i32 to index
    %109 = memref.load %arg1[%108] : memref<16xi32, #tpu.memory_space<smem>>
    %110 = arith.addi %1, %c5_i32 : i32
    %c8_i32_44 = arith.constant 8 : i32
    %c0_i32_45 = arith.constant 0 : i32
    %111 = arith.cmpi eq, %c8_i32_44, %c0_i32_45 : i32
    %c1_i32_46 = arith.constant 1 : i32
    %112 = arith.select %111, %c1_i32_46, %c8_i32_44 : i32
    %113 = arith.remsi %110, %112 : i32
    %c0_i32_47 = arith.constant 0 : i32
    %114 = arith.cmpi ne, %113, %c0_i32_47 : i32
    %c0_i32_48 = arith.constant 0 : i32
    %115 = arith.cmpi slt, %113, %c0_i32_48 : i32
    %c0_i32_49 = arith.constant 0 : i32
    %116 = arith.cmpi slt, %112, %c0_i32_49 : i32
    %117 = arith.xori %115, %116 : i1
    %118 = arith.andi %117, %114 : i1
    %119 = arith.addi %113, %112 : i32
    %120 = arith.select %118, %119, %113 : i32
    %121 = arith.index_cast %109 : i32 to index
    %c0_50 = arith.constant 0 : index
    %122 = vector.load %arg2[%121, %c0_50] : memref<512x128xf32, #tpu.memory_space<vmem>>, vector<1x128xf32>
    %123 = arith.index_cast %120 : i32 to index
    %c0_51 = arith.constant 0 : index
    %124 = vector.load %arg3[%123, %c0_51] : memref<8x128xf32, #tpu.memory_space<vmem>>, vector<1x128xf32>
    %125 = arith.addf %122, %124 : vector<1x128xf32>
    %126 = arith.index_cast %c5_i32 : i32 to index
    %c0_52 = arith.constant 0 : index
    %127 = vector.load %arg4[%126, %c0_52] : memref<8x128xf32, #tpu.memory_space<vmem>>, vector<1x128xf32>
    tpu.vector_store %arg4[%126, %c0_52], %125 {strides = array<i32>} : memref<8x128xf32, #tpu.memory_space<vmem>>, vector<1x128xf32>,
    %c6_i32 = arith.constant 6 : i32
    %128 = arith.addi %1, %c6_i32 : i32
    %129 = arith.index_cast %128 : i32 to index
    %130 = memref.load %arg1[%129] : memref<16xi32, #tpu.memory_space<smem>>
    %131 = arith.addi %1, %c6_i32 : i32
    %c8_i32_53 = arith.constant 8 : i32
    %c0_i32_54 = arith.constant 0 : i32
    %132 = arith.cmpi eq, %c8_i32_53, %c0_i32_54 : i32
    %c1_i32_55 = arith.constant 1 : i32
    %133 = arith.select %132, %c1_i32_55, %c8_i32_53 : i32
    %134 = arith.remsi %131, %133 : i32
    %c0_i32_56 = arith.constant 0 : i32
    %135 = arith.cmpi ne, %134, %c0_i32_56 : i32
    %c0_i32_57 = arith.constant 0 : i32
    %136 = arith.cmpi slt, %134, %c0_i32_57 : i32
    %c0_i32_58 = arith.constant 0 : i32
    %137 = arith.cmpi slt, %133, %c0_i32_58 : i32
    %138 = arith.xori %136, %137 : i1
    %139 = arith.andi %138, %135 : i1
    %140 = arith.addi %134, %133 : i32
    %141 = arith.select %139, %140, %134 : i32
    %142 = arith.index_cast %130 : i32 to index
    %c0_59 = arith.constant 0 : index
    %143 = vector.load %arg2[%142, %c0_59] : memref<512x128xf32, #tpu.memory_space<vmem>>, vector<1x128xf32>
    %144 = arith.index_cast %141 : i32 to index
    %c0_60 = arith.constant 0 : index
    %145 = vector.load %arg3[%144, %c0_60] : memref<8x128xf32, #tpu.memory_space<vmem>>, vector<1x128xf32>
    %146 = arith.addf %143, %145 : vector<1x128xf32>
    %147 = arith.index_cast %c6_i32 : i32 to index
    %c0_61 = arith.constant 0 : index
    %148 = vector.load %arg4[%147, %c0_61] : memref<8x128xf32, #tpu.memory_space<vmem>>, vector<1x128xf32>
    tpu.vector_store %arg4[%147, %c0_61], %146 {strides = array<i32>} : memref<8x128xf32, #tpu.memory_space<vmem>>, vector<1x128xf32>,
    %c7_i32 = arith.constant 7 : i32
    %149 = arith.addi %1, %c7_i32 : i32
    %150 = arith.index_cast %149 : i32 to index
    %151 = memref.load %arg1[%150] : memref<16xi32, #tpu.memory_space<smem>>
    %152 = arith.addi %1, %c7_i32 : i32
    %c8_i32_62 = arith.constant 8 : i32
    %c0_i32_63 = arith.constant 0 : i32
    %153 = arith.cmpi eq, %c8_i32_62, %c0_i32_63 : i32
    %c1_i32_64 = arith.constant 1 : i32
    %154 = arith.select %153, %c1_i32_64, %c8_i32_62 : i32
    %155 = arith.remsi %152, %154 : i32
    %c0_i32_65 = arith.constant 0 : i32
    %156 = arith.cmpi ne, %155, %c0_i32_65 : i32
    %c0_i32_66 = arith.constant 0 : i32
    %157 = arith.cmpi slt, %155, %c0_i32_66 : i32
    %c0_i32_67 = arith.constant 0 : i32
    %158 = arith.cmpi slt, %154, %c0_i32_67 : i32
    %159 = arith.xori %157, %158 : i1
    %160 = arith.andi %159, %156 : i1
    %161 = arith.addi %155, %154 : i32
    %162 = arith.select %160, %161, %155 : i32
    %163 = arith.index_cast %151 : i32 to index
    %c0_68 = arith.constant 0 : index
    %164 = vector.load %arg2[%163, %c0_68] : memref<512x128xf32, #tpu.memory_space<vmem>>, vector<1x128xf32>
    %165 = arith.index_cast %162 : i32 to index
    %c0_69 = arith.constant 0 : index
    %166 = vector.load %arg3[%165, %c0_69] : memref<8x128xf32, #tpu.memory_space<vmem>>, vector<1x128xf32>
    %167 = arith.addf %164, %166 : vector<1x128xf32>
    %168 = arith.index_cast %c7_i32 : i32 to index
    %c0_70 = arith.constant 0 : index
    %169 = vector.load %arg4[%168, %c0_70] : memref<8x128xf32, #tpu.memory_space<vmem>>, vector<1x128xf32>
    tpu.vector_store %arg4[%168, %c0_70], %167 {strides = array<i32>} : memref<8x128xf32, #tpu.memory_space<vmem>>, vector<1x128xf32>,
    %c8_i32_71 = arith.constant 8 : i32
    return
  }
  func.func @transform_0(%arg0: i32, %arg1: memref<16xi32, #tpu.memory_space<smem>>) -> (i32, i32) {
    %c0_i32 = arith.constant 0 : i32
    %c0_i32_0 = arith.constant 0 : i32
    %c0_i32_1 = arith.constant 0 : i32
    return %c0_i32, %c0_i32_0 : i32, i32
  }
  func.func @transform_1(%arg0: i32, %arg1: memref<16xi32, #tpu.memory_space<smem>>) -> (i32, i32) {
    %c0_i32 = arith.constant 0 : i32
    %c0_i32_0 = arith.constant 0 : i32
    %c0_i32_1 = arith.constant 0 : i32
    return %c0_i32, %c0_i32_0 : i32, i32
  }
  func.func @transform_2(%arg0: i32, %arg1: memref<16xi32, #tpu.memory_space<smem>>) -> (i32, i32) {
    %c0_i32 = arith.constant 0 : i32
    %c0_i32_0 = arith.constant 0 : i32
    return %arg0, %c0_i32 : i32, i32
  }
}

</mosaic_0001>

<bundles_post_ra>
// kernel: tpu_custom_call.1
= control target key start
LH: loop header
LB: loop body
LE: loop exit
PB: predicated region body
PF: predicated region fallthrough
CT: control target
= control target key end

     0   :  { %s670_s15 = smov [#allocation3]   ;;  %s832_s0 = inlined_call_operand.hbm [shape: s32[16], index: 0, kind: input, shape index: {}]   ;;  %s833_s1 = inlined_call_operand.hbm [shape: f32[512,128], index: 1, kind: input, shape index: {}]   ;;  %s834_s2 = inlined_call_operand.hbm [shape: f32[8,128], index: 2, kind: input, shape index: {}]   ;;  %s835_s3 = inlined_call_operand.hbm [shape: f32[16,128], index: 3, kind: output, shape index: {}]  }
   0x1   :  { %s9_s14 = sshll.u32 %s832_s0, 4  ;;  %s10_s14 = int_to_ptr.hbm [resolvable:$true] %s9_s14 }
   0x2   :  { %12 = dma.hbm_to_smem %s10_s14, 16, %s670_s15, [#allocation2] }
   0x3   :  { %640 = dma.done.wait [#allocation2], 16 }
   0x4   :  { %641 = vsyncadd [#allocation2], 4294967280 }
   0x5   :  { %15 = sfence }
   0x6   :  { %16 = vsyncpa [#allocation5], 0 }
   0x7   :  { %17 = vsyncpa [#allocation8], 0 }
   0x8   :  { %18 = vsyncpa [#allocation6], 0 }
   0x9   :  { %20 = vsyncpa [#allocation6 + $0x1], 0  ;;  %s698_s16 = smov 0   ;;  %s700_s17 = smov 0  }
   0xa   :  { %s702_s18 = smov 0   ;;  %s704_s19 = smov 0  }
   0xb LB: > { %s719_s0 = sadd.s32 4294967295, %s668_s19   ;;  %s424_s20 = sadd.s32 4294967294, %s668_s19   ;;  %s668_s19 = sphi %s704_s19, %s842_s19   ;;  %s664_s18 = sphi %s702_s18, %s841_s18   ;;  %s660_s17 = sphi %s700_s17, %s840_s17   ;;  %s656_s16 = sphi %s698_s16, %s839_s16  }
   0xc   : > { %s723_s21 = sadd.s32 1, %s668_s19   ;;  %s75_s22 = sadd.s32 1, %s664_s18 }
   0xd   : > { %s72_s23 = ssub.s32 %s668_s19, %s723_s21  ;;  %p85_p0 = scmp.ne.s32.totalorder %s664_s18, %s660_s17 }
   0xe   : > { %p73_p1 = scmp.eq.s32.totalorder %s72_s23, 0  ;;  %p86_p2 = scmp.eq.s32.totalorder %s719_s0, 1 }
   0xf   : > { %p91_p3 = scmp.ne.s32.totalorder %s660_s17, %s656_s16  ;;  %p92_p4 = scmp.eq.s32.totalorder %s424_s20, 1 }
  0x10   : > { %s734_s24 = scalar_select %p73_p1, %s664_s18, %s75_s22  }
  0x11   : > { %p736_p5 = por %p86_p2, %p85_p0  ;;  %p740_p6 = por %p92_p4, %p91_p3 }
  0x12   : > { %p425_p7 = scmp.ge.s32.totalorder %s668_s19, 1  ;;  %p99_p8 = scmp.lt.s32.totalorder %s668_s19, 3 }
  0x13   : > { %p482_p9 = scmp.eq.s32.totalorder %s719_s0, 0  ;;  %s110_s30 = sshll.u32 %s833_s1, 4  ;;  %s111_s30 = int_to_ptr.hbm [resolvable:$true] %s110_s30 }
  0x14   : > { %p747_p10 = pnand %p425_p7, %p99_p8  ;;  %s671_s4 = smov [#allocation4]  }
  0x15   : > { %s112_s5 = sshll.u32 %s671_s4, 4  ;;  %s125_s8 = sshll.u32 %s834_s2, 4  ;;  %s113_s5 = int_to_ptr.vmem [resolvable:$true] %s112_s5  ;;  %s126_s8 = int_to_ptr.hbm [resolvable:$true] %s125_s8 }
  0x16   : > { %p471_p11 = pneg %p747_p10  ;;  %s672_s9 = smov 128  }
  0x17   : > { %s673_s10 = smov 8   ;;  %s674_s11 = smov [#allocation7]  }
  0x18   : > { %p472_p12 = pnand %p482_p9, %p471_p11  ;;  %s127_s12 = sshll.u32 %s674_s11, 4  ;;  %s128_s12 = int_to_ptr.vmem [resolvable:$true] %s127_s12 }
  0x19   : > { %140 = sbr.rel (%p747_p10) target bundleno = 100 (0x64), region = 28 }
  0x1a   : > { %474 = dma.hbm_to_vmem [thread:$0]  (!%p472_p12), %s111_s30, 8192, %s113_s5, [#allocation5], %s672_s9, %s672_s9, %s673_s10  }
  0x1b   : > { %477 = dma.hbm_to_vmem [thread:$0]  (!%p472_p12), %s126_s8, 128, %s128_s12, [#allocation8]  }
  0x1e   : > { %643 = dma.done.wait (%p482_p9), [#allocation5], 8192  }
  0x1f   : > { %645 = vsyncadd (%p482_p9), [#allocation5], 4294959104 }
  0x20   : > { %647 = dma.done.wait (%p482_p9), [#allocation8], 128  }
  0x21   : > { %649 = vsyncadd (%p482_p9), [#allocation8], 4294967168  ;;  %s160_s13 = sand.u32 1, %s660_s17   ;;  %s773_s14 = sshll.u32 %s719_s0, 3 }
  0x22   : > { %s431_s15 = sshll.u32 %s160_s13, 3  ;;  %s164_s20 = sld [smem:[#allocation3 + %s773_s14]] }
  0x23   : > { %p165_p13 = scmp.lt.s32.totalorder %s773_s14, 0  ;;  %s166_s22 = ssub.s32 0, %s773_s14 }
  0x24   : > { %s433_s23 = smin.u32 %s773_s14, %s166_s22  ;;  %s183_s28 = sadd.s32 1, %s773_s14 }
  0x25   : > { %s168_s27 = sand.u32 7, %s433_s23   ;;  %s184_s30 = sld [smem:[#allocation3 + %s183_s28]] }
  0x26   : > { %s169_s29 = ssub.s32 0, %s168_s27  ;;  %s186_s4 = ssub.s32 0, %s183_s28 }
  0x27   : > { %s844_s29 = smov (!%p165_p13, %s169_s29), %s168_s27  ;;  %p185_p1 = scmp.lt.s32.totalorder %s183_s28, 0 }
  0x28   : > { %p435_p0 = scmp.lt.s32.totalorder %s844_s29, 0  ;;  %s175_s0 = sadd.s32 8, %s844_s29 }
  0x29   : > { %s436_s5 = smin.u32 %s186_s4, %s183_s28  ;;  %s177_s6 = scalar_lea.vmem [#allocation4], %s164_s20 }
  0x2a   : > { %s846_s0 = smov (!%p435_p0, %s175_s0), %s844_s29  ;;  %v178_v0 = vld [vmem:[%s177_s6] sm:$0x1]  ;;  %s188_s7 = sand.u32 7, %s436_s5  }
  0x2b   : > { %s203_s8 = sadd.s32 2, %s773_s14  ;;  %s189_s9 = ssub.s32 0, %s188_s7 }
  0x2c   : > { %s179_s10 = scalar_lea.vmem [#allocation7], %s846_s0  ;;  %s848_s9 = smov (!%p185_p1, %s189_s9), %s188_s7 }
  0x2d   : > { %v180_v1 = vld [vmem:[%s179_s10] sm:$0x1]  ;;  %s204_s11 = sld [smem:[#allocation3 + %s203_s8]]  ;;  %p438_p2 = scmp.lt.s32.totalorder %s848_s9, 0 }
  0x2e   : > { %v181_v2 = vadd.f32 %v180_v1, %v178_v0  ;;  %s195_s12 = sadd.s32 8, %s848_s9  ;;  %s783_s22 = scalar_lea.vmem [#allocation9], %s431_s15 }
  0x2f   : > { %p205_p3 = scmp.lt.s32.totalorder %s203_s8, 0  ;;  %s206_s23 = ssub.s32 0, %s203_s8 }
  0x30   : > { %182 = vst [vmem:[%s783_s22] sm:$0x1] %v181_v2  ;;  %s850_s12 = smov (!%p438_p2, %s195_s12), %s848_s9  ;;  %s197_s20 = scalar_lea.vmem [#allocation4], %s184_s30 }
  0x31   : > { %v198_v3 = vld [vmem:[%s197_s20] sm:$0x1]  ;;  %s439_s27 = smin.u32 %s206_s23, %s203_s8  ;;  %s223_s28 = sadd.s32 3, %s773_s14 }
  0x32   : > { %s208_s29 = sand.u32 7, %s439_s27   ;;  %s199_s4 = scalar_lea.vmem [#allocation7], %s850_s12 }
  0x33   : > { %v200_v4 = vld [vmem:[%s199_s4] sm:$0x1]  ;;  %s209_s0 = ssub.s32 0, %s208_s29  ;;  %s224_s5 = sld [smem:[#allocation3 + %s223_s28]] }
  0x34   : > { %v201_v5 = vadd.f32 %v200_v4, %v198_v3  ;;  %s852_s0 = smov (!%p205_p3, %s209_s0), %s208_s29  ;;  %s226_s15 = ssub.s32 0, %s223_s28 }
  0x35   : > { %p441_p4 = scmp.lt.s32.totalorder %s852_s0, 0  ;;  %s215_s6 = sadd.s32 8, %s852_s0 }
  0x36   : > { %202 = vst [vmem:[%s783_s22 + $0x1] sm:$0x1] %v201_v5  ;;  %p225_p7 = scmp.lt.s32.totalorder %s223_s28, 0  ;;  %s442_s7 = smin.u32 %s226_s15, %s223_s28 }
  0x37   : > { %s854_s6 = smov (!%p441_p4, %s215_s6), %s852_s0  ;;  %s217_s30 = scalar_lea.vmem [#allocation4], %s204_s11 }
  0x38   : > { %v218_v6 = vld [vmem:[%s217_s30] sm:$0x1]  ;;  %s228_s8 = sand.u32 7, %s442_s7   ;;  %s243_s9 = sadd.s32 4, %s773_s14 }
  0x39   : > { %s229_s10 = ssub.s32 0, %s228_s8  ;;  %s219_s12 = scalar_lea.vmem [#allocation7], %s854_s6 }
  0x3a   : > { %v220_v7 = vld [vmem:[%s219_s12] sm:$0x1]  ;;  %s856_s10 = smov (!%p225_p7, %s229_s10), %s228_s8  ;;  %s244_s23 = sld [smem:[#allocation3 + %s243_s9]] }
  0x3b   : > { %v221_v8 = vadd.f32 %v220_v7, %v218_v6  ;;  %p444_p8 = scmp.lt.s32.totalorder %s856_s10, 0  ;;  %s235_s20 = sadd.s32 8, %s856_s10 }
  0x3c   : > { %p245_p9 = scmp.lt.s32.totalorder %s243_s9, 0  ;;  %s246_s27 = ssub.s32 0, %s243_s9 }
  0x3d   : > { %222 = vst [vmem:[%s783_s22 + $0x2] sm:$0x1] %v221_v8  ;;  %s858_s20 = smov (!%p444_p8, %s235_s20), %s856_s10  ;;  %s237_s28 = scalar_lea.vmem [#allocation4], %s224_s5 }
  0x3e   : > { %v238_v9 = vld [vmem:[%s237_s28] sm:$0x1]  ;;  %s445_s11 = smin.u32 %s246_s27, %s243_s9  ;;  %s263_s29 = sadd.s32 5, %s773_s14 }
  0x3f   : > { %s248_s4 = sand.u32 7, %s445_s11   ;;  %s239_s0 = scalar_lea.vmem [#allocation7], %s858_s20 }
  0x40   : > { %v240_v10 = vld [vmem:[%s239_s0] sm:$0x1]  ;;  %s249_s15 = ssub.s32 0, %s248_s4  ;;  %s264_s6 = sld [smem:[#allocation3 + %s263_s29]] }
  0x41   : > { %v241_v11 = vadd.f32 %v240_v10, %v238_v9  ;;  %s860_s15 = smov (!%p245_p9, %s249_s15), %s248_s4  ;;  %s266_s7 = ssub.s32 0, %s263_s29 }
  0x42   : > { %p447_p10 = scmp.lt.s32.totalorder %s860_s15, 0  ;;  %s255_s30 = sadd.s32 8, %s860_s15 }
  0x43   : > { %242 = vst [vmem:[%s783_s22 + $0x3] sm:$0x1] %v241_v11  ;;  %p265_p11 = scmp.lt.s32.totalorder %s263_s29, 0  ;;  %s448_s8 = smin.u32 %s266_s7, %s263_s29 }
  0x44   : > { %s862_s30 = smov (!%p447_p10, %s255_s30), %s860_s15  ;;  %s257_s5 = scalar_lea.vmem [#allocation4], %s244_s23 }
  0x45   : > { %v258_v12 = vld [vmem:[%s257_s5] sm:$0x1]  ;;  %s268_s9 = sand.u32 7, %s448_s8   ;;  %s283_s10 = sadd.s32 6, %s773_s14 }
  0x46   : > { %s269_s12 = ssub.s32 0, %s268_s9  ;;  %s259_s20 = scalar_lea.vmem [#allocation7], %s862_s30 }
  0x47   : > { %v260_v13 = vld [vmem:[%s259_s20] sm:$0x1]  ;;  %s864_s12 = smov (!%p265_p11, %s269_s12), %s268_s9  ;;  %s284_s27 = sld [smem:[#allocation3 + %s283_s10]] }
  0x48   : > { %v261_v14 = vadd.f32 %v260_v13, %v258_v12  ;;  %p450_p12 = scmp.lt.s32.totalorder %s864_s12, 0  ;;  %s275_s28 = sadd.s32 8, %s864_s12 }
  0x49   : > { %p285_p13 = scmp.lt.s32.totalorder %s283_s10, 0  ;;  %s286_s11 = ssub.s32 0, %s283_s10 }
  0x4a   : > { %262 = vst [vmem:[%s783_s22 + $0x4] sm:$0x1] %v261_v14  ;;  %s866_s28 = smov (!%p450_p12, %s275_s28), %s864_s12  ;;  %s277_s29 = scalar_lea.vmem [#allocation4], %s264_s6 }
  0x4b   : > { %v278_v15 = vld [vmem:[%s277_s29] sm:$0x1]  ;;  %s451_s23 = smin.u32 %s286_s11, %s283_s10  ;;  %s303_s4 = sadd.s32 7, %s773_s14 }
  0x4c   : > { %s288_s0 = sand.u32 7, %s451_s23   ;;  %s279_s15 = scalar_lea.vmem [#allocation7], %s866_s28 }
  0x4d   : > { %v280_v16 = vld [vmem:[%s279_s15] sm:$0x1]  ;;  %s289_s7 = ssub.s32 0, %s288_s0  ;;  %s304_s30 = sld [smem:[#allocation3 + %s303_s4]] }
  0x4e   : > { %v281_v17 = vadd.f32 %v280_v16, %v278_v15  ;;  %s868_s7 = smov (!%p285_p13, %s289_s7), %s288_s0  ;;  %s306_s8 = ssub.s32 0, %s303_s4 }
  0x4f   : > { %p453_p0 = scmp.lt.s32.totalorder %s868_s7, 0  ;;  %s295_s5 = sadd.s32 8, %s868_s7 }
  0x50   : > { %282 = vst [vmem:[%s783_s22 + $0x5] sm:$0x1] %v281_v17  ;;  %p305_p1 = scmp.lt.s32.totalorder %s303_s4, 0  ;;  %s454_s9 = smin.u32 %s306_s8, %s303_s4 }
  0x51   : > { %s870_s5 = smov (!%p453_p0, %s295_s5), %s868_s7  ;;  %s297_s6 = scalar_lea.vmem [#allocation4], %s284_s27 }
  0x52   : > { %v298_v18 = vld [vmem:[%s297_s6] sm:$0x1]  ;;  %s308_s10 = sand.u32 7, %s454_s9   ;;  %s299_s20 = scalar_lea.vmem [#allocation7], %s870_s5 }
  0x53   : > { %s309_s12 = ssub.s32 0, %s308_s10  ;;  %v300_v19 = vld [vmem:[%s299_s20] sm:$0x1]  ;;  %s334_s29 = scalar_lea.hbm %s835_s3, %s773_s14 }
  0x54   : > { %s872_s12 = smov (!%p305_p1, %s309_s12), %s308_s10  ;;  %v301_v20 = vadd.f32 %v300_v19, %v298_v18  ;;  %s317_s4 = scalar_lea.vmem [#allocation4], %s304_s30 }
  0x55   : > { %p456_p2 = scmp.lt.s32.totalorder %s872_s12, 0  ;;  %s315_s23 = sadd.s32 8, %s872_s12  ;;  %v318_v21 = vld [vmem:[%s317_s4] sm:$0x1] }
  0x56   : > { %302 = vst [vmem:[%s783_s22 + $0x6] sm:$0x1] %v301_v20  ;;  %s336_s27 = sshll.u32 %s783_s22, 4  ;;  %s338_s0 = sshll.u32 %s334_s29, 4  ;;  %s337_s27 = int_to_ptr.vmem [resolvable:$true] %s336_s27  ;;  %s339_s0 = int_to_ptr.hbm [resolvable:$true] %s338_s0 }
  0x57   : > { %s874_s23 = smov (!%p456_p2, %s315_s23), %s872_s12  ;;  %s324_s7 = scalar_lea.sflag [#allocation6], %s160_s13 }
  0x58   : > { %s319_s15 = scalar_lea.vmem [#allocation7], %s874_s23  ;;  %s610_s8 = sshra.s32 %s339_s0, 4  ;;  %s611_s8 = int_to_ptr.hbm [resolvable:$true] %s610_s8 }
  0x59   : > { %v320_v22 = vld [vmem:[%s319_s15] sm:$0x1]  ;;  %s612_s14 = scalar_lea.hbm %s611_s8, 8  ;;  %s616_s9 = scalar_lea.hbm %s835_s3, 16 }
  0x5a   : > { %v321_v23 = vadd.f32 %v320_v22, %v318_v21  ;;  %p613_p3 = scmp.ne.s32.totalorder %s611_s8, %s612_s14  ;;  %p617_p8 = scmp.lt.s32.totalorder %s611_s8, %s835_s3 }
  0x5b   : > { %p618_p9 = scmp.lt.s32.totalorder %s616_s9, %s612_s14 }
  0x5c   : > { %322 = vst [vmem:[%s783_s22 + $0x7] sm:$0x1] %v321_v23  ;;  %p614_p4 = pnand %p613_p3, %p736_p5 }
  0x5d   : > { %p619_p10 = por %p618_p9, %p617_p8 }
  0x5e   : > { %p615_p7 = pneg %p614_p4 }
  0x60   : > { %p620_p11 = pnand %p619_p10, %p615_p7 }
  0x62   : > { %623 = shalt.err (!%p620_p11)
}
  0x63   : > { %469 = dma.vmem_to_hbm [thread:$0]  (%p736_p5), %s337_s27, 128, %s339_s0, %s324_s7  }
  0x64 PF: > { %p486_p12 = scmp.ge.s32.totalorder %s668_s19, 2  ;;  %s350_s13 = sand.u32 1, %s656_s16  }
  0x65   : > { %s351_s22 = scalar_lea.sflag [#allocation6], %s350_s13 }
  0x66   : > { %p479_p13 = pnand %p486_p12, %p740_p6 }
  0x68   : > { %p480_p0 = pneg %p479_p13 }
  0x6a   : > { %651 = dma.done.wait (%p480_p0), %s351_s22, 128  }
  0x6b   : > { %653 = vsyncadd (%p480_p0), %s351_s22, 4294967168  ;;  %p23_p1 = scmp.ge.s32.totalorder %s723_s21, 4   ;;  %s839_s16 = smov %s660_s17 }
  0x6c   : > { %s840_s17 = smov %s664_s18  ;;  %s841_s18 = smov %s734_s24 }
  0x6d   : > { %s842_s19 = smov %s723_s21  ;;  %25 = sbr.rel (!%p23_p1) target bundleno = 11 (0xb), region = 85 }
  0x72   :  { %357 = vsyncpa [#allocation5], 1 }
  0x73   :  { %359 = vsyncpa [#allocation5 + $0x1], 1 }
  0x74   :  { %360 = vsyncpa [#allocation8], 1 }
  0x75   :  { %361 = vsyncpa [#allocation6], 1 }
  0x76   :  { %363 = vsyncpa [#allocation6 + $0x1], 1 }

</bundles_post_ra>
